<compile_context>
chip_gen: v5e
topology: v5e:2x2
jax: 0.10.0
libtpu: 0.0.40
codegen_flags: <defaults>
</compile_context>

<pallas_src>
import jax
import jax.numpy as jnp
from jax.experimental import pallas as pl
from jax.experimental.pallas import tpu as pltpu
from jax.scipy.special import ndtri

# ----------------------------------------------------------------------------
# NFK (double blockwise NF4) quantization — plain-JAX parameter setup that
# mirrors juju_tools NFK.quant / NFK.dequant / compute_normal_fpk.
# ----------------------------------------------------------------------------
W_BLOCKS = 64
C_BLOCKS = 256


def compute_normal_fpk(bits: int = 4, e: float = 0.967752) -> jnp.ndarray:
    half_1 = 2 ** bits // 2
    half_2 = 2 ** bits // 2 + 1
    lin1 = jnp.linspace(0.5, e, half_1).astype(jnp.float16).astype(jnp.float32)
    lin2 = jnp.linspace(0.5, e, half_2).astype(jnp.float16).astype(jnp.float32)
    v1 = (-ndtri(lin1))[1:]          # norm.ppf == ndtri
    v2 = ndtri(lin2)
    g = jnp.sort(jnp.concatenate([v1, v2]))
    g = g / jnp.max(g)
    return g.astype(jnp.bfloat16)    # 16 NF4 code values


def nfk_quant(data, nf4):
    assert data.size % W_BLOCKS == 0 and data[..., 0].size % C_BLOCKS == 0
    n = data.size // W_BLOCKS
    Wb = data.reshape(n, W_BLOCKS).astype(jnp.float32)
    c_scales = jnp.max(jnp.abs(Wb), axis=-1, keepdims=True)            # (n, 1)
    W_scaled = (Wb / c_scales).reshape(-1, 1)
    diff = jnp.abs(W_scaled - nf4.astype(jnp.float32).reshape(1, -1))
    idx = jnp.argmin(diff, axis=-1)                                    # (numel,) in [0,16)
    # 8-bit blockwise quantization of the absmax scales
    mean = jnp.mean(c_scales)
    cs = (c_scales - mean).reshape(-1, C_BLOCKS)
    css = (127.0 / jnp.max(jnp.abs(cs), axis=-1, keepdims=True)).astype(jnp.float32)
    csq = jnp.clip(jnp.round(cs * css), -128, 127).astype(jnp.int8)
    # pack two 4-bit codes per byte
    packed = (idx[0::2].astype(jnp.uint8) << 4) | idx[1::2].astype(jnp.uint8)
    return packed, csq, css, mean


def nfk_dequant(packed, csq, css, mean, nf4, out_shape):
    # dequantize scales: int8 -> fp32 -> bf16 (+ fp32 mean)
    c_scales = (csq.astype(jnp.float32) / css).reshape(-1, 1).astype(jnp.bfloat16) + mean
    hi = (packed >> 4).astype(jnp.int32)
    lo = (packed & 15).astype(jnp.int32)
    idx = jnp.stack([hi, lo], axis=-1).reshape(-1)
    W_near = nf4[idx].reshape(-1, W_BLOCKS)                            # bf16 codebook values
    W_dq = W_near.astype(jnp.bfloat16) * c_scales.astype(jnp.bfloat16)
    return W_dq.reshape(out_shape)                                     # bf16 (out, in)


def prepare_ffn_weights(w1, w2, nf4, th):
    """One-time weight prep (NOT the per-call hot path).

    Quantize+dequantize both projections to bf16, emit them in (in, out) layout,
    and interleave W1 into per-tile [a | gate] column blocks of width `th` so the
    kernel issues ONE DMA and ONE x-matmul per H tile, then slices the result.
    """
    w1_dq = nfk_dequant(*nfk_quant(w1, nf4), nf4, w1.shape)   # (2H, D) bf16
    w2_dq = nfk_dequant(*nfk_quant(w2, nf4), nf4, w2.shape)   # (D,  H) bf16
    two_h, D = w1.shape
    H = two_h // 2
    assert H % th == 0, "th must divide H"
    w1a_t = jnp.transpose(w1_dq[:H])                          # (D, H)
    w1g_t = jnp.transpose(w1_dq[H:])                          # (D, H)
    nt = H // th
    # per-tile [a | g] layout: tile j = columns [j*2*th, j*2*th + th) of 'a',
    # then [j*2*th + th, (j+1)*2*th) of 'gate'.
    w1ag_t = jnp.concatenate(
        [w1a_t.reshape(D, nt, 1, th), w1g_t.reshape(D, nt, 1, th)], axis=2
    ).reshape(D, 2 * H)                                       # (D, 2H) bf16
    w2_t = jnp.transpose(w2_dq)                               # (H, D) bf16
    return w1_dq, w2_dq, w1ag_t, w2_t


# ----------------------------------------------------------------------------
# Fused FFN Pallas kernel: (x @ [W1a|W1g]) -> slice -> SiLU gate -> (@ W2)
# grid = (M_tiles, H_tiles); H is a streamed reduction axis; the fp32 output
# block is resident across the H axis and serves as the accumulator (no scratch).
# ----------------------------------------------------------------------------
def ffn_nf4_kernel(x_ref, w1ag_ref, w2_ref, o_ref):
    # x_ref: (tm, D) bf16 ; w1ag_ref: (D, 2*th) bf16 ; w2_ref: (th, D) bf16
    # o_ref: (tm, D) fp32, resident across j (accumulator)
    j = pl.program_id(1)

    @pl.when(j == 0)
    def _init():
        o_ref[...] = jnp.zeros_like(o_ref)

    x = x_ref[...]
    y = jnp.dot(x, w1ag_ref[...], preferred_element_type=jnp.float32)  # (tm, 2*th)
    th = y.shape[1] // 2
    # LinearNFK: bf16 matmul result is cast back to the fp32 input dtype.
    a = y[:, :th].astype(jnp.bfloat16).astype(jnp.float32)
    g = y[:, th:].astype(jnp.bfloat16).astype(jnp.float32)
    z = a * g
    h = z * jax.nn.sigmoid(z)                                 # SiLU(a * gate), fp32 (EUP)
    o_ref[...] += jnp.dot(h.astype(jnp.bfloat16), w2_ref[...],
                          preferred_element_type=jnp.float32)

    @pl.when(j == pl.num_programs(1) - 1)
    def _finalize():
        # second LinearNFK also rounds through bf16 before casting back to fp32
        o_ref[...] = o_ref[...].astype(jnp.bfloat16).astype(o_ref.dtype)


def _round_up(a, b):
    return (a + b - 1) // b * b


def _pick_h_tile(H, preferred):
    """Prefer 256-granular tiles (v6e/v7x MXU is 256 wide); never fall back to a
    huge th=H tile that could blow the scoped-VMEM limit."""
    for t in (preferred, 512, 256, 128):
        if 0 < t <= H and H % t == 0:
            return t
    if H <= 1024:
        return H                      # small H: one tile is cheap
    for t in range(1024, 127, -128):  # largest 128-granular divisor <= 1024
        if H % t == 0:
            return t
    raise ValueError(f"H={H} must be a multiple of 128 for the fused FFN kernel")


def _device_config():
    """Generation-aware (tm, th, vmem_limit_bytes, two_tensorcores)."""
    kind = ""
    try:
        kind = jax.devices()[0].device_kind.lower()
    except Exception:
        pass
    vmem_cap = None
    try:
        vmem_cap = pltpu.get_tpu_info().vmem_capacity_bytes
    except Exception:
        pass

    if "v7" in kind or (vmem_cap is not None and vmem_cap <= 72 * 2**20):
        # v7x: 64 MiB VMEM/TC, ~3.2 TB/s HBM, 2 TCs -> tm~256 already near
        # compute-bound; keep tiles and the scoped-VMEM limit modest.
        tm, th, vmem, two_tc = 256, 256, 52 * 2**20, True
    elif "v6" in kind:
        # v6e: 128 MiB VMEM; 918 TF/s vs ~1.4 TB/s -> need tm>=512 to approach the
        # MXU roofline; wide th cuts fp32-accumulate RMW and per-step overhead.
        tm, th, vmem, two_tc = 512, 512, 100 * 2**20, False
    else:
        # v5e (and other 128 MiB parts / unknown): ~197 TF/s vs 0.82 TB/s is about
        # roofline-balanced at tm=256; wide th still halves the j-step count.
        tm, th, vmem, two_tc = 256, 512, 96 * 2**20, False

    if vmem_cap is not None:  # never request more scoped VMEM than the chip has
        vmem = min(vmem, max(32 * 2**20, vmem_cap - 12 * 2**20))
    return tm, th, vmem, two_tc


def feedforward_nf4(x, w1ag_t, w2_t, *, th, tm=256,
                    vmem_limit_bytes=64 * 1024 * 1024,
                    split_m_for_megacore=False):
    """x: (B, S, D) fp32; w1ag_t: (D, 2H) bf16 per-tile [a|g]; w2_t: (H, D) bf16."""
    orig_dtype = x.dtype
    B, S, D = x.shape
    H = w1ag_t.shape[1] // 2
    assert w1ag_t.shape == (D, 2 * H) and w2_t.shape == (H, D)
    assert D % 128 == 0, "D must be lane-dense (multiple of 128; 256 preferred)"
    assert H % th == 0, "th must divide H (use _pick_h_tile / prepare_ffn_weights)"

    M = B * S
    # M tile: multiple of 16 (bf16 sublane packing), capped at the requested tm;
    # pad M up to a whole number of tiles and slice the tail off afterwards.
    tm = _round_up(max(16, min(tm, _round_up(M, 16))), 16)
    # v7x megacore: if everything fits in one M tile, split it in two so both
    # TensorCores get work along the "parallel" axis (no benefit on 1-TC chips).
    if split_m_for_megacore and M >= 32 and _round_up(M, 16) <= tm:
        tm = _round_up((M + 1) // 2, 16)
    M_pad = _round_up(M, tm)

    x2 = x.reshape(M, D).astype(jnp.bfloat16)
    if M_pad != M:
        x2 = jnp.pad(x2, ((0, M_pad - M), (0, 0)))

    grid = (M_pad // tm, H // th)
    out = pl.pallas_call(
        ffn_nf4_kernel,
        # fp32 accumulator-output (values are bf16-exact after the in-kernel
        # rounding; callers wanting bf16 can cast outside for free).
        out_shape=jax.ShapeDtypeStruct((M_pad, D), jnp.float32),
        grid_spec=pltpu.PrefetchScalarGridSpec(
            num_scalar_prefetch=0,
            grid=grid,
            in_specs=[
                # x is resident across j (its block index only changes with i).
                # TODO(synk): pipeline_mode=pl.Buffered(1) here would reclaim one
                # tm*D*2-byte VMEM buffer; left at the default for portability.
                pl.BlockSpec((tm, D), lambda i, j: (i, 0)),
                pl.BlockSpec((D, 2 * th), lambda i, j: (0, j)),   # fused [a|g] W1 tile
                pl.BlockSpec((th, D), lambda i, j: (j, 0)),       # W2 row tile
            ],
            out_specs=pl.BlockSpec((tm, D), lambda i, j: (i, 0)),  # resident across j
        ),
        compiler_params=pltpu.CompilerParams(
            dimension_semantics=("parallel", "arbitrary"),
            vmem_limit_bytes=vmem_limit_bytes,
        ),
    )(x2, w1ag_t, w2_t)
    if M_pad != M:
        out = out[:M]
    return out.reshape(B, S, D).astype(orig_dtype)


# ----------------------------------------------------------------------------
# Pure-JAX reference (same dequantized weights, torch (out, in) layout)
# ----------------------------------------------------------------------------
def reference(x, w1_dq, w2_dq):
    xb = x.astype(jnp.bfloat16)
    y = jnp.dot(xb, w1_dq.T, preferred_element_type=jnp.float32)
    y = y.astype(jnp.bfloat16).astype(x.dtype)
    a, g = jnp.split(y, 2, axis=-1)
    z = a * g
    h = z * jax.nn.sigmoid(z)
    out = jnp.dot(h.astype(jnp.bfloat16), w2_dq.T, preferred_element_type=jnp.float32)
    return out.astype(jnp.bfloat16).astype(x.dtype)


if __name__ == "__main__":
    # dim chosen so the NFK divisibility asserts (W_BLOCKS=64, C_BLOCKS=256) hold
    dim, scale = 256, 1
    batch, seq = 2, 8

    key = jax.random.PRNGKey(0)
    k1, k2, kx = jax.random.split(key, 3)
    # torch.randn-style weights in (out_features, in_features) layout
    w1 = jax.random.normal(k1, (2 * scale * dim, dim), jnp.float32)   # proj
    w2 = jax.random.normal(k2, (dim, scale * dim), jnp.float32)       # proj_out
    x = jax.random.normal(kx, (batch, seq, dim), jnp.float32)

    nf4 = compute_normal_fpk(4)

    tm_cfg, th_cfg, vmem_limit, two_tc = _device_config()
    H = scale * dim
    th = _pick_h_tile(H, th_cfg)

    w1_dq, w2_dq, w1ag_t, w2_t = prepare_ffn_weights(w1, w2, nf4, th)

    out = jax.block_until_ready(
        feedforward_nf4(x, w1ag_t, w2_t, th=th, tm=tm_cfg,
                        vmem_limit_bytes=vmem_limit,
                        split_m_for_megacore=two_tc))

    ref = reference(x, w1_dq, w2_dq)
    rel = float(jnp.max(jnp.abs(out - ref)) / (jnp.max(jnp.abs(ref)) + 1e-6))
    assert out.shape == x.shape and out.dtype == x.dtype and rel < 2e-2, rel
    print("KERNEL_OK")
</pallas_src>

<mosaic_0001>
module attributes {stable_mosaic.version = 11 : i64} {
  func.func @ffn_nf4_kernel(%arg0: i32, %arg1: i32, %arg2: memref<16x256xbf16, #tpu.memory_space<vmem>>, %arg3: memref<256x512xbf16, #tpu.memory_space<vmem>>, %arg4: memref<256x256xbf16, #tpu.memory_space<vmem>>, %arg5: memref<16x256xf32, #tpu.memory_space<vmem>>) attributes {dimension_semantics = [#tpu.dimension_semantics<parallel>, #tpu.dimension_semantics<arbitrary>], iteration_bounds = array<i64: 1, 1>, scalar_prefetch = 0 : i64, scratch_operands = 0 : i64, tpu.core_type = #tpu.core_type<tc>, window_params = [{transform_indices = @transform_0, window_bounds = array<i64: 16, 256>}, {transform_indices = @transform_1, window_bounds = array<i64: 256, 512>}, {transform_indices = @transform_2, window_bounds = array<i64: 256, 256>}, {transform_indices = @transform_3, window_bounds = array<i64: 16, 256>}]} {
    %c0_i32 = arith.constant 0 : i32
    %0 = arith.cmpi eq, %arg1, %c0_i32 : i32
    %1 = arith.extui %0 : i1 to i32
    %c0_i32_0 = arith.constant 0 : i32
    %2 = arith.cmpi ne, %1, %c0_i32_0 : i32
    scf.if %2 {
      %cst_14 = arith.constant 0.000000e+00 : f32
      %28 = vector.broadcast %cst_14 : f32 to vector<16x256xf32>
      %c0_15 = arith.constant 0 : index
      %c0_16 = arith.constant 0 : index
      %29 = vector.load %arg5[%c0_15, %c0_16] : memref<16x256xf32, #tpu.memory_space<vmem>>, vector<16x256xf32>
      tpu.vector_store %arg5[%c0_15, %c0_16], %28 {strides = array<i32>} : memref<16x256xf32, #tpu.memory_space<vmem>>, vector<16x256xf32>,
    } else {
    }
    %c0 = arith.constant 0 : index
    %c0_1 = arith.constant 0 : index
    %3 = vector.load %arg2[%c0, %c0_1] : memref<16x256xbf16, #tpu.memory_space<vmem>>, vector<16x256xbf16>
    %c0_2 = arith.constant 0 : index
    %c0_3 = arith.constant 0 : index
    %4 = vector.load %arg3[%c0_2, %c0_3] : memref<256x512xbf16, #tpu.memory_space<vmem>>, vector<256x512xbf16>
    %cst = arith.constant dense<0.000000e+00> : vector<16x512xf32>
    %5 = tpu.matmul %3, %4, %cst {dimension_numbers = #tpu.dot_dimension_numbers<[1], [0], [0], [1], [0, 0, 1, 1], [], []>} : vector<16x256xbf16>, vector<256x512xbf16>, vector<16x512xf32> -> vector<16x512xf32>
    %6 = vector.extract_strided_slice %5 {offsets = [0, 0], sizes = [16, 256], strides = [1, 1]} : vector<16x512xf32> to vector<16x256xf32>
    %7 = arith.truncf %6 : vector<16x256xf32> to vector<16x256xbf16>
    %8 = arith.extf %7 : vector<16x256xbf16> to vector<16x256xf32>
    %9 = vector.extract_strided_slice %5 {offsets = [0, 256], sizes = [16, 256], strides = [1, 1]} : vector<16x512xf32> to vector<16x256xf32>
    %10 = arith.truncf %9 : vector<16x256xf32> to vector<16x256xbf16>
    %11 = arith.extf %10 : vector<16x256xbf16> to vector<16x256xf32>
    %12 = arith.mulf %8, %11 : vector<16x256xf32>
    %13 = arith.negf %12 : vector<16x256xf32>
    %14 = math.exp %13 : vector<16x256xf32>
    %cst_4 = arith.constant 1.000000e+00 : f32
    %15 = vector.broadcast %cst_4 : f32 to vector<16x256xf32>
    %16 = arith.addf %15, %14 : vector<16x256xf32>
    %17 = arith.divf %15, %16 : vector<16x256xf32>
    %18 = arith.mulf %12, %17 : vector<16x256xf32>
    %c0_5 = arith.constant 0 : index
    %c0_6 = arith.constant 0 : index
    %19 = vector.load %arg5[%c0_5, %c0_6] : memref<16x256xf32, #tpu.memory_space<vmem>>, vector<16x256xf32>
    %20 = arith.truncf %18 : vector<16x256xf32> to vector<16x256xbf16>
    %c0_7 = arith.constant 0 : index
    %c0_8 = arith.constant 0 : index
    %21 = vector.load %arg4[%c0_7, %c0_8] : memref<256x256xbf16, #tpu.memory_space<vmem>>, vector<256x256xbf16>
    %cst_9 = arith.constant dense<0.000000e+00> : vector<16x256xf32>
    %22 = tpu.matmul %20, %21, %cst_9 {dimension_numbers = #tpu.dot_dimension_numbers<[1], [0], [0], [1], [0, 0, 1, 1], [], []>} : vector<16x256xbf16>, vector<256x256xbf16>, vector<16x256xf32> -> vector<16x256xf32>
    %23 = arith.addf %19, %22 : vector<16x256xf32>
    %c0_10 = arith.constant 0 : index
    %c0_11 = arith.constant 0 : index
    %24 = vector.load %arg5[%c0_10, %c0_11] : memref<16x256xf32, #tpu.memory_space<vmem>>, vector<16x256xf32>
    tpu.vector_store %arg5[%c0_10, %c0_11], %23 {strides = array<i32>} : memref<16x256xf32, #tpu.memory_space<vmem>>, vector<16x256xf32>,
    %c0_i32_12 = arith.constant 0 : i32
    %25 = arith.cmpi eq, %arg1, %c0_i32_12 : i32
    %26 = arith.extui %25 : i1 to i32
    %c0_i32_13 = arith.constant 0 : i32
    %27 = arith.cmpi ne, %26, %c0_i32_13 : i32
    scf.if %27 {
      %c0_14 = arith.constant 0 : index
      %c0_15 = arith.constant 0 : index
      %28 = vector.load %arg5[%c0_14, %c0_15] : memref<16x256xf32, #tpu.memory_space<vmem>>, vector<16x256xf32>
      %29 = arith.truncf %28 : vector<16x256xf32> to vector<16x256xbf16>
      %30 = arith.extf %29 : vector<16x256xbf16> to vector<16x256xf32>
      %c0_16 = arith.constant 0 : index
      %c0_17 = arith.constant 0 : index
      %31 = vector.load %arg5[%c0_16, %c0_17] : memref<16x256xf32, #tpu.memory_space<vmem>>, vector<16x256xf32>
      tpu.vector_store %arg5[%c0_16, %c0_17], %30 {strides = array<i32>} : memref<16x256xf32, #tpu.memory_space<vmem>>, vector<16x256xf32>,
    } else {
    }
    return
  }
  func.func @transform_0(%arg0: i32, %arg1: i32) -> (i32, i32) {
    %c0_i32 = arith.constant 0 : i32
    %c0_i32_0 = arith.constant 0 : i32
    return %arg0, %c0_i32 : i32, i32
  }
  func.func @transform_1(%arg0: i32, %arg1: i32) -> (i32, i32) {
    %c0_i32 = arith.constant 0 : i32
    %c0_i32_0 = arith.constant 0 : i32
    return %c0_i32, %arg1 : i32, i32
  }
  func.func @transform_2(%arg0: i32, %arg1: i32) -> (i32, i32) {
    %c0_i32 = arith.constant 0 : i32
    %c0_i32_0 = arith.constant 0 : i32
    return %arg1, %c0_i32 : i32, i32
  }
  func.func @transform_3(%arg0: i32, %arg1: i32) -> (i32, i32) {
    %c0_i32 = arith.constant 0 : i32
    %c0_i32_0 = arith.constant 0 : i32
    return %arg0, %c0_i32 : i32, i32
  }
}

</mosaic_0001>

<bundles_post_ra>
// kernel: tpu_custom_call.1
= control target key start
LH: loop header
LB: loop body
LE: loop exit
PB: predicated region body
PF: predicated region fallthrough
CT: control target
= control target key end

     0   :  { %8 = vsyncpa [#allocation3], 0  ;;  %s1690_s0 = inlined_call_operand.hbm [shape: bf16[16,256], index: 0, kind: input, shape index: {}]   ;;  %s1691_s1 = inlined_call_operand.hbm [shape: bf16[256,512], index: 1, kind: input, shape index: {}]   ;;  %s1692_s2 = inlined_call_operand.hbm [shape: bf16[256,256], index: 2, kind: input, shape index: {}]   ;;  %s1693_s3 = inlined_call_operand.hbm [shape: f32[16,256], index: 3, kind: output, shape index: {}]  }
   0x1   :  { %9 = vsyncpa [#allocation6], 0  ;;  %s28_s14 = sshll.u32 %s1691_s1, 4  ;;  %s29_s14 = int_to_ptr.hbm [resolvable:$true] %s28_s14 }
   0x2   :  { %10 = vsyncpa [#allocation4], 0  ;;  %s1594_s15 = smov [#allocation5]   ;;  %s15_s19 = sshll.u32 %s1690_s0, 4  ;;  %s16_s19 = int_to_ptr.hbm [resolvable:$true] %s15_s19 }
   0x3   :  { %s30_s16 = sshll.u32 %s1594_s15, 4  ;;  %s1595_s20 = smov 256   ;;  %s31_s16 = int_to_ptr.vmem [resolvable:$true] %s30_s16 }
   0x4   :  { %s1596_s21 = smov 16   ;;  %s1597_s22 = smov [#allocation2]  }
   0x5   :  { %36 = dma.hbm_to_vmem [thread:$0]  %s29_s14, 8192, %s31_s16, [#allocation6], %s1595_s20, %s1595_s20, %s1596_s21  }
   0x6   :  { %s17_s23 = sshll.u32 %s1597_s22, 4  ;;  %s1598_s1 = smov 128   ;;  %s18_s23 = int_to_ptr.vmem [resolvable:$true] %s17_s23 }
   0x7   :  { %s1599_s24 = smov 8   ;;  %s41_s27 = sshll.u32 %s1692_s2, 4  ;;  %s42_s27 = int_to_ptr.hbm [resolvable:$true] %s41_s27 }
   0x8   :  { %23 = dma.hbm_to_vmem [thread:$0]  %s16_s19, 256, %s18_s23, [#allocation3], %s1598_s1, %s1598_s1, %s1599_s24  }
   0x9   :  { %s1600_s28 = smov [#allocation7]  }
   0xa   :  { %s43_s0 = sshll.u32 %s1600_s28, 4  ;;  %s44_s0 = int_to_ptr.vmem [resolvable:$true] %s43_s0 }
   0xb   :  { %49 = dma.hbm_to_vmem [thread:$0]  %s42_s27, 4096, %s44_s0, [#allocation6], %s1598_s1, %s1598_s1, %s1599_s24  }
   0xc   :  { %1588 = dma.done.wait [#allocation3], 256  }
   0xd   :  { %1589 = vsyncadd [#allocation3], 4294967040 }
   0xe   :  { %1590 = dma.done.wait [#allocation6], 12288  }
   0xf   :  { %1591 = vsyncadd [#allocation6], 4294955008  ;;  %v1095_v0 = vld [vmem:[#allocation5 + $0xe0] sm:$0xf]  ;;  %v1401_v1 = vld [vmem:[#allocation5 + $0xec] sm:$0xf0] }
  0x10   :  { %v1223_v2 = vld [vmem:[#allocation5 + $0x1e0] sm:$0xf]  ;;  %v1096_v3 = vor.u32 %v1401_v1, %v1095_v0  ;;  %v1433_v4 = vld [vmem:[#allocation5 + $0x1ec] sm:$0xf0]  ;;  %v1399_v5 = vld [vmem:[#allocation5 + $0xe4] sm:$0xf] }
  0x11   :  { %v1097_v6 = vld [vmem:[#allocation5 + $0xf0] sm:$0xf0]  ;;  %v1224_v7 = vor.u32 %v1433_v4, %v1223_v2  ;;  %v1431_v9 = vld [vmem:[#allocation5 + $0x1e4] sm:$0xf]  ;;  %v1079_v11 = vld [vmem:[#allocation5 + $0xc0] sm:$0xf] }
  0x12   :  { %v1100_v8 = vor.u32 %v1399_v5, %v1097_v6  ;;  %v1225_v10 = vld [vmem:[#allocation5 + $0x1f0] sm:$0xf0]  ;;  %466 = vmatpush.bf16.msra.mxu0 %v1096_v3  ;;  %v1397_v13 = vld [vmem:[#allocation5 + $0xcc] sm:$0xf0]  ;;  %v1207_v14 = vld [vmem:[#allocation5 + $0x1c0] sm:$0xf] }
  0x13   :  { %v1228_v12 = vor.u32 %v1431_v9, %v1225_v10  ;;  %v1429_v15 = vld [vmem:[#allocation5 + $0x1cc] sm:$0xf0]  ;;  %480 = vmatpush.bf16.msra.mxu1 %v1224_v7  ;;  %v1080_v16 = vor.u32 %v1397_v13, %v1079_v11  ;;  %v1395_v18 = vld [vmem:[#allocation5 + $0xc4] sm:$0xf]  ;;  %v1081_v19 = vld [vmem:[#allocation5 + $0xd0] sm:$0xf0] }
  0x14   :  { %494 = vmatpush.bf16.msra.mxu2 %v1100_v8  ;;  %v1208_v17 = vor.u32 %v1429_v15, %v1207_v14  ;;  %v1427_v20 = vld [vmem:[#allocation5 + $0x1c4] sm:$0xf]  ;;  %v1084_v21 = vor.u32 %v1395_v18, %v1081_v19  ;;  %v1209_v22 = vld [vmem:[#allocation5 + $0x1d0] sm:$0xf0]  ;;  %v1063_v23 = vld [vmem:[#allocation5 + $0xa0] sm:$0xf] }
  0x15   :  { %508 = vmatpush.bf16.msra.mxu3 %v1228_v12  ;;  %v1393_v24 = vld [vmem:[#allocation5 + $0xac] sm:$0xf0]  ;;  %v1212_v25 = vor.u32 %v1427_v20, %v1209_v22  ;;  %v1191_v26 = vld [vmem:[#allocation5 + $0x1a0] sm:$0xf]  ;;  %v1391_v28 = vld [vmem:[#allocation5 + $0xa4] sm:$0xf] }
  0x16   :  { %v1425_v27 = vld [vmem:[#allocation5 + $0x1ac] sm:$0xf0]  ;;  %467 = vmatpush.bf16.msra.mxu0 %v1080_v16  ;;  %v1064_v29 = vor.u32 %v1393_v24, %v1063_v23  ;;  %v1065_v30 = vld [vmem:[#allocation5 + $0xb0] sm:$0xf0]  ;;  %v1423_v31 = vld [vmem:[#allocation5 + $0x1a4] sm:$0xf] }
  0x17   :  { %v1193_v32 = vld [vmem:[#allocation5 + $0x1b0] sm:$0xf0]  ;;  %481 = vmatpush.bf16.msra.mxu1 %v1208_v17  ;;  %v1192_v33 = vor.u32 %v1425_v27, %v1191_v26  ;;  %v1068_v34 = vor.u32 %v1391_v28, %v1065_v30  ;;  %v1047_v35 = vld [vmem:[#allocation5 + $0x80] sm:$0xf]  ;;  %v1389_v36 = vld [vmem:[#allocation5 + $0x8c] sm:$0xf0] }
  0x18   :  { %495 = vmatpush.bf16.msra.mxu2 %v1084_v21  ;;  %v1175_v37 = vld [vmem:[#allocation5 + $0x180] sm:$0xf]  ;;  %v1196_v38 = vor.u32 %v1423_v31, %v1193_v32  ;;  %v1421_v39 = vld [vmem:[#allocation5 + $0x18c] sm:$0xf0]  ;;  %v1387_v40 = vld [vmem:[#allocation5 + $0x84] sm:$0xf]  ;;  %v1048_v44 = vor.u32 %v1389_v36, %v1047_v35 }
  0x19   :  { %509 = vmatpush.bf16.msra.mxu3 %v1212_v25  ;;  %v1049_v41 = vld [vmem:[#allocation5 + $0x90] sm:$0xf0]  ;;  %v1419_v42 = vld [vmem:[#allocation5 + $0x184] sm:$0xf]  ;;  %v1176_v45 = vor.u32 %v1421_v39, %v1175_v37  ;;  %v1031_v47 = vld [vmem:[#allocation5 + $0x60] sm:$0xf] }
  0x1a   :  { %v1177_v43 = vld [vmem:[#allocation5 + $0x190] sm:$0xf0]  ;;  %468 = vmatpush.bf16.msra.mxu0 %v1064_v29  ;;  %v1052_v46 = vor.u32 %v1387_v40, %v1049_v41  ;;  %v1385_v48 = vld [vmem:[#allocation5 + $0x6c] sm:$0xf0]  ;;  %v1159_v49 = vld [vmem:[#allocation5 + $0x160] sm:$0xf] }
  0x1b   :  { %482 = vmatpush.bf16.msra.mxu1 %v1192_v33  ;;  %v1180_v50 = vor.u32 %v1419_v42, %v1177_v43  ;;  %v1417_v51 = vld [vmem:[#allocation5 + $0x16c] sm:$0xf0]  ;;  %v1383_v52 = vld [vmem:[#allocation5 + $0x64] sm:$0xf]  ;;  %v1033_v53 = vld [vmem:[#allocation5 + $0x70] sm:$0xf0]  ;;  %v1032_v56 = vor.u32 %v1385_v48, %v1031_v47 }
  0x1c   :  { %496 = vmatpush.bf16.msra.mxu2 %v1068_v34  ;;  %v1415_v54 = vld [vmem:[#allocation5 + $0x164] sm:$0xf]  ;;  %v1161_v55 = vld [vmem:[#allocation5 + $0x170] sm:$0xf0]  ;;  %v1160_v57 = vor.u32 %v1417_v51, %v1159_v49  ;;  %v1036_v58 = vor.u32 %v1383_v52, %v1033_v53  ;;  %v1015_v59 = vld [vmem:[#allocation5 + $0x40] sm:$0xf] }
  0x1d   :  { %510 = vmatpush.bf16.msra.mxu3 %v1196_v38  ;;  %v1381_v60 = vld [vmem:[#allocation5 + $0x4c] sm:$0xf0]  ;;  %v1143_v61 = vld [vmem:[#allocation5 + $0x140] sm:$0xf]  ;;  %v1164_v62 = vor.u32 %v1415_v54, %v1161_v55  ;;  %v1379_v0 = vld [vmem:[#allocation5 + $0x44] sm:$0xf] }
  0x1e   :  { %469 = vmatpush.bf16.msra.mxu0 %v1048_v44  ;;  %v1413_v63 = vld [vmem:[#allocation5 + $0x14c] sm:$0xf0]  ;;  %v1017_v1 = vld [vmem:[#allocation5 + $0x50] sm:$0xf0]  ;;  %v1411_v2 = vld [vmem:[#allocation5 + $0x144] sm:$0xf]  ;;  %v1016_v4 = vor.u32 %v1381_v60, %v1015_v59 }
  0x1f   :  { %483 = vmatpush.bf16.msra.mxu1 %v1176_v45  ;;  %v1145_v3 = vld [vmem:[#allocation5 + $0x150] sm:$0xf0]  ;;  %v1144_v5 = vor.u32 %v1413_v63, %v1143_v61  ;;  %v1020_v6 = vor.u32 %v1379_v0, %v1017_v1  ;;  %v999_v7 = vld [vmem:[#allocation5 + $0x20] sm:$0xf]  ;;  %v1377_v8 = vld [vmem:[#allocation5 + $0x2c] sm:$0xf0] }
  0x20   :  { %497 = vmatpush.bf16.msra.mxu2 %v1052_v46  ;;  %v1127_v9 = vld [vmem:[#allocation5 + $0x120] sm:$0xf]  ;;  %v1148_v10 = vor.u32 %v1411_v2, %v1145_v3  ;;  %v1409_v11 = vld [vmem:[#allocation5 + $0x12c] sm:$0xf0]  ;;  %v1375_v12 = vld [vmem:[#allocation5 + $0x24] sm:$0xf]  ;;  %v1000_v16 = vor.u32 %v1377_v8, %v999_v7 }
  0x21   :  { %511 = vmatpush.bf16.msra.mxu3 %v1180_v50  ;;  %v1001_v13 = vld [vmem:[#allocation5 + $0x30] sm:$0xf0]  ;;  %v1407_v14 = vld [vmem:[#allocation5 + $0x124] sm:$0xf]  ;;  %v983_v17 = vld [vmem:[#allocation5] sm:$0xf]  ;;  %v1128_v20 = vor.u32 %v1409_v11, %v1127_v9 }
  0x22   :  { %470 = vmatpush.bf16.msra.mxu0 %v1032_v56  ;;  %v1129_v15 = vld [vmem:[#allocation5 + $0x130] sm:$0xf0]  ;;  %v1373_v18 = vld [vmem:[#allocation5 + $0xc] sm:$0xf0]  ;;  %v1111_v19 = vld [vmem:[#allocation5 + $0x100] sm:$0xf]  ;;  %v1004_v21 = vor.u32 %v1375_v12, %v1001_v13 }
  0x23   :  { %484 = vmatpush.bf16.msra.mxu1 %v1160_v57  ;;  %v1405_v22 = vld [vmem:[#allocation5 + $0x10c] sm:$0xf0]  ;;  %v1371_v23 = vld [vmem:[#allocation5 + $0x4] sm:$0xf]  ;;  %v985_v24 = vld [vmem:[#allocation5 + $0x10] sm:$0xf0]  ;;  %v1132_v25 = vor.u32 %v1407_v14, %v1129_v15  ;;  %v984_v32 = vor.u32 %v1373_v18, %v983_v17 }
  0x24   :  { %498 = vmatpush.bf16.msra.mxu2 %v1036_v58  ;;  %v1403_v26 = vld [vmem:[#allocation5 + $0x104] sm:$0xf]  ;;  %v1113_v27 = vld [vmem:[#allocation5 + $0x110] sm:$0xf0]  ;;  %v1103_v28 = vld [vmem:[#allocation5 + $0xe8] sm:$0xf]  ;;  %v1112_v36 = vor.u32 %v1405_v22, %v1111_v19  ;;  %v988_v37 = vor.u32 %v1371_v23, %v985_v24 }
  0x25   :  { %512 = vmatpush.bf16.msra.mxu3 %v1164_v62  ;;  %v1402_v29 = vld [vmem:[#allocation5 + $0xf4] sm:$0xf0]  ;;  %v1231_v30 = vld [vmem:[#allocation5 + $0x1e8] sm:$0xf]  ;;  %v1400_v33 = vld [vmem:[#allocation5 + $0xec] sm:$0xf]  ;;  %v1116_v41 = vor.u32 %v1403_v26, %v1113_v27 }
  0x26   :  { %471 = vmatpush.bf16.msra.mxu0 %v1016_v4  ;;  %v1434_v31 = vld [vmem:[#allocation5 + $0x1f4] sm:$0xf0]  ;;  %v1105_v34 = vld [vmem:[#allocation5 + $0xf8] sm:$0xf0]  ;;  %v1432_v35 = vld [vmem:[#allocation5 + $0x1ec] sm:$0xf]  ;;  %v1104_v42 = vor.u32 %v1402_v29, %v1103_v28 }
  0x27   :  { %485 = vmatpush.bf16.msra.mxu1 %v1144_v5  ;;  %v1233_v38 = vld [vmem:[#allocation5 + $0x1f8] sm:$0xf0]  ;;  %v975_v39 = vld [vmem:[#allocation2] sm:$0xf]  ;;  %v1370_v40 = vld [vmem:[#allocation2 + $0x4] sm:$0xf0]  ;;  %v1232_v45 = vor.u32 %v1434_v31, %v1231_v30  ;;  %v1108_v46 = vor.u32 %v1400_v33, %v1105_v34 }
  0x28   :  { %499 = vmatpush.bf16.msra.mxu2 %v1020_v6  ;;  %v1369_v43 = vld [vmem:[#allocation2 + $0x4] sm:$0xf]  ;;  %v977_v44 = vld [vmem:[#allocation2 + $0x8] sm:$0xf0]  ;;  %v1087_v47 = vld [vmem:[#allocation5 + $0xc8] sm:$0xf]  ;;  %v1236_v50 = vor.u32 %v1432_v35, %v1233_v38  ;;  %v1634_v54 = vor.u32 %v1370_v40, %v975_v39 }
  0x29   :  { %513 = vmatpush.bf16.msra.mxu3 %v1148_v10  ;;  %v1398_v48 = vld [vmem:[#allocation5 + $0xd4] sm:$0xf0]  ;;  %v1215_v49 = vld [vmem:[#allocation5 + $0x1c8] sm:$0xf]  ;;  %v1396_v52 = vld [vmem:[#allocation5 + $0xcc] sm:$0xf]  ;;  %v1636_v57 = vor.u32 %v1369_v43, %v977_v44 }
  0x2a   :  { %472 = vmatpush.bf16.msra.mxu0 %v1000_v16  ;;  %v1430_v51 = vld [vmem:[#allocation5 + $0x1d4] sm:$0xf0]  ;;  %v1089_v53 = vld [vmem:[#allocation5 + $0xd8] sm:$0xf0]  ;;  %v1428_v55 = vld [vmem:[#allocation5 + $0x1cc] sm:$0xf]  ;;  %v1088_v58 = vor.u32 %v1398_v48, %v1087_v47 }
  0x2b   :  { %486 = vmatpush.bf16.msra.mxu1 %v1128_v20  ;;  %v1217_v56 = vld [vmem:[#allocation5 + $0x1d8] sm:$0xf0]  ;;  %v1216_v59 = vor.u32 %v1430_v51, %v1215_v49  ;;  %v1092_v60 = vor.u32 %v1396_v52, %v1089_v53  ;;  %v1071_v61 = vld [vmem:[#allocation5 + $0xa8] sm:$0xf]  ;;  %v1394_v62 = vld [vmem:[#allocation5 + $0xb4] sm:$0xf0] }
  0x2c   :  { %500 = vmatpush.bf16.msra.mxu2 %v1004_v21  ;;  %v1199_v63 = vld [vmem:[#allocation5 + $0x1a8] sm:$0xf]  ;;  %v1220_v0 = vor.u32 %v1428_v55, %v1217_v56  ;;  %v1426_v1 = vld [vmem:[#allocation5 + $0x1b4] sm:$0xf0]  ;;  %v1392_v2 = vld [vmem:[#allocation5 + $0xac] sm:$0xf]  ;;  %v1072_v6 = vor.u32 %v1394_v62, %v1071_v61 }
  0x2d   :  { %514 = vmatpush.bf16.msra.mxu3 %v1132_v25  ;;  %v1073_v3 = vld [vmem:[#allocation5 + $0xb8] sm:$0xf0]  ;;  %v1424_v4 = vld [vmem:[#allocation5 + $0x1ac] sm:$0xf]  ;;  %v1200_v7 = vor.u32 %v1426_v1, %v1199_v63  ;;  %v1055_v9 = vld [vmem:[#allocation5 + $0x88] sm:$0xf] }
  0x2e   :  { %473 = vmatpush.bf16.msra.mxu0 %v984_v32  ;;  %v1201_v5 = vld [vmem:[#allocation5 + $0x1b8] sm:$0xf0]  ;;  %v1076_v8 = vor.u32 %v1392_v2, %v1073_v3  ;;  %v1390_v10 = vld [vmem:[#allocation5 + $0x94] sm:$0xf0]  ;;  %v1183_v11 = vld [vmem:[#allocation5 + $0x188] sm:$0xf] }
  0x2f   :  { %487 = vmatpush.bf16.msra.mxu1 %v1112_v36  ;;  %v1204_v12 = vor.u32 %v1424_v4, %v1201_v5  ;;  %v1422_v13 = vld [vmem:[#allocation5 + $0x194] sm:$0xf0]  ;;  %v1388_v14 = vld [vmem:[#allocation5 + $0x8c] sm:$0xf]  ;;  %v1057_v15 = vld [vmem:[#allocation5 + $0x98] sm:$0xf0]  ;;  %v1056_v18 = vor.u32 %v1390_v10, %v1055_v9 }
  0x30   :  { %501 = vmatpush.bf16.msra.mxu2 %v988_v37  ;;  %v1420_v16 = vld [vmem:[#allocation5 + $0x18c] sm:$0xf]  ;;  %v1185_v17 = vld [vmem:[#allocation5 + $0x198] sm:$0xf0]  ;;  %v1184_v19 = vor.u32 %v1422_v13, %v1183_v11  ;;  %v1060_v20 = vor.u32 %v1388_v14, %v1057_v15  ;;  %v1039_v21 = vld [vmem:[#allocation5 + $0x68] sm:$0xf] }
  0x31   :  { %515 = vmatpush.bf16.msra.mxu3 %v1116_v41  ;;  %474 = vmatmul.bf16.vlgmr.msra.gmra.mxu0 %v1634_v54  ;;  %v1386_v22 = vld [vmem:[#allocation5 + $0x74] sm:$0xf0]  ;;  %v1167_v23 = vld [vmem:[#allocation5 + $0x168] sm:$0xf]  ;;  %v1188_v24 = vor.u32 %v1420_v16, %v1185_v17  ;;  %v1384_v26 = vld [vmem:[#allocation5 + $0x6c] sm:$0xf] }
  0x32   :  { %522 = vmatpush.bf16.msrb.mxu0 %v1104_v42  ;;  %488 = vmatmul.bf16.vlgmr.msra.gmra.mxu1 %v1636_v57  ;;  %v1418_v25 = vld [vmem:[#allocation5 + $0x174] sm:$0xf0]  ;;  %v1041_v27 = vld [vmem:[#allocation5 + $0x78] sm:$0xf0]  ;;  %v1416_v28 = vld [vmem:[#allocation5 + $0x16c] sm:$0xf]  ;;  %v1040_v30 = vor.u32 %v1386_v22, %v1039_v21 }
  0x33   :  { %536 = vmatpush.bf16.msrb.mxu1 %v1232_v45  ;;  %502 = vmatmul.bf16.vlgmr.msra.gmra.mxu2 %v1634_v54  ;;  %v1169_v29 = vld [vmem:[#allocation5 + $0x178] sm:$0xf0]  ;;  %v1168_v31 = vor.u32 %v1418_v25, %v1167_v23  ;;  %v1044_v32 = vor.u32 %v1384_v26, %v1041_v27  ;;  %v1023_v33 = vld [vmem:[#allocation5 + $0x48] sm:$0xf]  ;;  %v1382_v34 = vld [vmem:[#allocation5 + $0x54] sm:$0xf0] }
  0x34   :  { %550 = vmatpush.bf16.msrb.mxu2 %v1108_v46  ;;  %516 = vmatmul.bf16.vlgmr.msra.gmra.mxu3 %v1636_v57  ;;  %v1151_v35 = vld [vmem:[#allocation5 + $0x148] sm:$0xf]  ;;  %v1172_v36 = vor.u32 %v1416_v28, %v1169_v29  ;;  %v1414_v37 = vld [vmem:[#allocation5 + $0x154] sm:$0xf0]  ;;  %v1380_v38 = vld [vmem:[#allocation5 + $0x4c] sm:$0xf]  ;;  %v1024_v42 = vor.u32 %v1382_v34, %v1023_v33 }
  0x35   :  { %564 = vmatpush.bf16.msrb.mxu3 %v1236_v50  ;;  %v1025_v39 = vld [vmem:[#allocation5 + $0x58] sm:$0xf0]  ;;  %v1412_v40 = vld [vmem:[#allocation5 + $0x14c] sm:$0xf]  ;;  %v1152_v43 = vor.u32 %v1414_v37, %v1151_v35  ;;  %v1007_v45 = vld [vmem:[#allocation5 + $0x28] sm:$0xf] }
  0x36   :  { %523 = vmatpush.bf16.msrb.mxu0 %v1088_v58  ;;  %v1153_v41 = vld [vmem:[#allocation5 + $0x158] sm:$0xf0]  ;;  %v1028_v44 = vor.u32 %v1380_v38, %v1025_v39  ;;  %v1378_v46 = vld [vmem:[#allocation5 + $0x34] sm:$0xf0]  ;;  %v1135_v47 = vld [vmem:[#allocation5 + $0x128] sm:$0xf] }
  0x37   :  { %537 = vmatpush.bf16.msrb.mxu1 %v1216_v59  ;;  %v1156_v48 = vor.u32 %v1412_v40, %v1153_v41  ;;  %v1410_v49 = vld [vmem:[#allocation5 + $0x134] sm:$0xf0]  ;;  %v1376_v50 = vld [vmem:[#allocation5 + $0x2c] sm:$0xf]  ;;  %v1009_v51 = vld [vmem:[#allocation5 + $0x38] sm:$0xf0]  ;;  %v1008_v55 = vor.u32 %v1378_v46, %v1007_v45 }
  0x38   :  { %551 = vmatpush.bf16.msrb.mxu2 %v1092_v60  ;;  %v1408_v52 = vld [vmem:[#allocation5 + $0x12c] sm:$0xf]  ;;  %v1137_v53 = vld [vmem:[#allocation5 + $0x138] sm:$0xf0]  ;;  %v1136_v56 = vor.u32 %v1410_v49, %v1135_v47  ;;  %v1012_v58 = vor.u32 %v1376_v50, %v1009_v51  ;;  %v991_v59 = vld [vmem:[#allocation5 + $0x8] sm:$0xf] }
  0x39   :  { %565 = vmatpush.bf16.msrb.mxu3 %v1220_v0  ;;  %v1374_v60 = vld [vmem:[#allocation5 + $0x14] sm:$0xf0]  ;;  %v1119_v61 = vld [vmem:[#allocation5 + $0x108] sm:$0xf]  ;;  %v1140_v62 = vor.u32 %v1408_v52, %v1137_v53  ;;  %v1372_v0 = vld [vmem:[#allocation5 + $0xc] sm:$0xf] }
  0x3a   :  { %524 = vmatpush.bf16.msrb.mxu0 %v1072_v6  ;;  %v1406_v63 = vld [vmem:[#allocation5 + $0x114] sm:$0xf0]  ;;  %v993_v1 = vld [vmem:[#allocation5 + $0x18] sm:$0xf0]  ;;  %v1404_v2 = vld [vmem:[#allocation5 + $0x10c] sm:$0xf]  ;;  %v992_v4 = vor.u32 %v1374_v60, %v991_v59 }
  0x3b   :  { %538 = vmatpush.bf16.msrb.mxu1 %v1200_v7  ;;  %v1121_v3 = vld [vmem:[#allocation5 + $0x118] sm:$0xf0]  ;;  %v1120_v5 = vor.u32 %v1406_v63, %v1119_v61  ;;  %v996_v6 = vor.u32 %v1372_v0, %v993_v1  ;;  %v1299_v14 = vld [vmem:[#allocation7 + $0x70] sm:$0xf]  ;;  %v1450_v15 = vld [vmem:[#allocation7 + $0x74] sm:$0xf0] }
  0x3c   :  { %552 = vmatpush.bf16.msrb.mxu2 %v1076_v8  ;;  %v1124_v7 = vor.u32 %v1404_v2, %v1121_v3  ;;  %v1363_v16 = vld [vmem:[#allocation7 + $0xf0] sm:$0xf]  ;;  %v1300_v17 = vor.u32 %v1450_v15, %v1299_v14  ;;  %v1365_v23 = vld [vmem:[#allocation7 + $0xf8] sm:$0xf0]  ;;  %v1291_v25 = vld [vmem:[#allocation7 + $0x60] sm:$0xf] }
  0x3d   :  { %566 = vmatpush.bf16.msrb.mxu3 %v1204_v12  ;;  %v1448_v26 = vld [vmem:[#allocation7 + $0x64] sm:$0xf0]  ;;  %v1355_v27 = vld [vmem:[#allocation7 + $0xe0] sm:$0xf]  ;;  %v1463_v35 = vld [vmem:[#allocation7 + $0xe4] sm:$0xf] }
  0x3e   :  { %525 = vmatpush.bf16.msrb.mxu0 %v1056_v18  ;;  %v1466_v18 = vld [vmem:[#allocation7 + $0xf4] sm:$0xf0]  ;;  %v1292_v29 = vor.u32 %v1448_v26, %v1291_v25  ;;  %v1283_v40 = vld [vmem:[#allocation7 + $0x50] sm:$0xf]  ;;  %v1445_v47 = vld [vmem:[#allocation7 + $0x54] sm:$0xf] }
  0x3f   :  { %539 = vmatpush.bf16.msrb.mxu1 %v1184_v19  ;;  %v1449_v19 = vld [vmem:[#allocation7 + $0x74] sm:$0xf]  ;;  %v1364_v21 = vor.u32 %v1466_v18, %v1363_v16  ;;  %v1446_v41 = vld [vmem:[#allocation7 + $0x54] sm:$0xf0]  ;;  %v1349_v52 = vld [vmem:[#allocation7 + $0xd8] sm:$0xf0] }
  0x40   :  { %553 = vmatpush.bf16.msrb.mxu2 %v1060_v20  ;;  %v1301_v20 = vld [vmem:[#allocation7 + $0x78] sm:$0xf0]  ;;  %v1284_v45 = vor.u32 %v1446_v41, %v1283_v40  ;;  %v1462_v46 = vld [vmem:[#allocation7 + $0xd4] sm:$0xf0]  ;;  %v1461_v51 = vld [vmem:[#allocation7 + $0xd4] sm:$0xf] }
  0x41   :  { %567 = vmatpush.bf16.msrb.mxu3 %v1188_v24  ;;  %v1304_v22 = vor.u32 %v1449_v19, %v1301_v20  ;;  %v1352_v53 = vor.u32 %v1461_v51, %v1349_v52  ;;  %v1444_v59 = vld [vmem:[#allocation7 + $0x44] sm:$0xf0]  ;;  %v1339_v60 = vld [vmem:[#allocation7 + $0xc0] sm:$0xf]  ;;  %v1443_v1 = vld [vmem:[#allocation7 + $0x44] sm:$0xf] }
  0x42   :  { %526 = vmatpush.bf16.msrb.mxu0 %v1040_v30  ;;  %v1464_v30 = vld [vmem:[#allocation7 + $0xe4] sm:$0xf0]  ;;  %v1277_v2 = vld [vmem:[#allocation7 + $0x48] sm:$0xf0]  ;;  %v1442_v14 = vld [vmem:[#allocation7 + $0x34] sm:$0xf0] }
  0x43   :  { %540 = vmatpush.bf16.msrb.mxu1 %v1168_v31  ;;  %v1447_v31 = vld [vmem:[#allocation7 + $0x64] sm:$0xf]  ;;  %v1356_v33 = vor.u32 %v1464_v30, %v1355_v27  ;;  %v1460_v0 = vld [vmem:[#allocation7 + $0xc4] sm:$0xf0]  ;;  %v1331_v15 = vld [vmem:[#allocation7 + $0xb0] sm:$0xf] }
  0x44   :  { %554 = vmatpush.bf16.msrb.mxu2 %v1044_v32  ;;  %v1293_v32 = vld [vmem:[#allocation7 + $0x68] sm:$0xf0]  ;;  %v1458_v20 = vld [vmem:[#allocation7 + $0xb4] sm:$0xf0]  ;;  %v1457_v26 = vld [vmem:[#allocation7 + $0xb4] sm:$0xf] }
  0x45   :  { %568 = vmatpush.bf16.msrb.mxu3 %v1172_v36  ;;  %v1296_v34 = vor.u32 %v1447_v31, %v1293_v32  ;;  %v1357_v36 = vld [vmem:[#allocation7 + $0xe8] sm:$0xf0]  ;;  %v1333_v27 = vld [vmem:[#allocation7 + $0xb8] sm:$0xf0]  ;;  %v1440_v32 = vld [vmem:[#allocation7 + $0x24] sm:$0xf0] }
  0x46   :  { %527 = vmatpush.bf16.msrb.mxu0 %v1024_v42  ;;  %v1360_v37 = vor.u32 %v1463_v35, %v1357_v36  ;;  %v1347_v42 = vld [vmem:[#allocation7 + $0xd0] sm:$0xf]  ;;  %v1261_v40 = vld [vmem:[#allocation7 + $0x28] sm:$0xf0]  ;;  %v1438_v51 = vld [vmem:[#allocation7 + $0x14] sm:$0xf0] }
  0x47   :  { %541 = vmatpush.bf16.msrb.mxu1 %v1152_v43  ;;  %v1348_v49 = vor.u32 %v1462_v46, %v1347_v42  ;;  %v1315_v52 = vld [vmem:[#allocation7 + $0x90] sm:$0xf]  ;;  %s1601_s2 = smov [#allocation8]   ;;  %s959_s5 = sshll.u32 %s1693_s3, 4  ;;  %s960_s5 = int_to_ptr.hbm [resolvable:$true] %s959_s5 }
  0x48   :  { %555 = vmatpush.bf16.msrb.mxu2 %v1028_v44  ;;  %s957_s29 = sshll.u32 %s1601_s2, 4  ;;  %s958_s29 = int_to_ptr.vmem [resolvable:$true] %s957_s29 }
  0x49   :  { %569 = vmatpush.bf16.msrb.mxu3 %v1156_v48  ;;  %v1285_v48 = vld [vmem:[#allocation7 + $0x58] sm:$0xf0] }
  0x4a   :  { %528 = vmatpush.bf16.msrb.mxu0 %v1008_v55  ;;  %v1288_v50 = vor.u32 %v1445_v47, %v1285_v48  ;;  %v1325_v47 = vld [vmem:[#allocation7 + $0xa8] sm:$0xf0] }
  0x4b   :  { %542 = vmatpush.bf16.msrb.mxu1 %v1136_v56 }
  0x4c   :  { %556 = vmatpush.bf16.msrb.mxu2 %v1012_v58  ;;  %v1275_v58 = vld [vmem:[#allocation7 + $0x40] sm:$0xf] }
  0x4d   :  { %570 = vmatpush.bf16.msrb.mxu3 %v1140_v62  ;;  %v1276_v63 = vor.u32 %v1444_v59, %v1275_v58  ;;  %v1454_v58 = vld [vmem:[#allocation7 + $0x94] sm:$0xf0]  ;;  %v1437_v59 = vld [vmem:[#allocation7 + $0x14] sm:$0xf] }
  0x4e   :  { %529 = vmatpush.bf16.msrb.mxu0 %v992_v4  ;;  %v1340_v4 = vor.u32 %v1460_v0, %v1339_v60  ;;  %v1253_v60 = vld [vmem:[#allocation7 + $0x18] sm:$0xf0] }
  0x4f   :  { %543 = vmatpush.bf16.msrb.mxu1 %v1120_v5  ;;  %v1280_v5 = vor.u32 %v1443_v1, %v1277_v2  ;;  %v1256_v0 = vor.u32 %v1437_v59, %v1253_v60  ;;  %v1453_v1 = vld [vmem:[#allocation7 + $0x94] sm:$0xf]  ;;  %v1317_v2 = vld [vmem:[#allocation7 + $0x98] sm:$0xf0] }
  0x50   :  { %557 = vmatpush.bf16.msrb.mxu2 %v996_v6  ;;  %v1459_v6 = vld [vmem:[#allocation7 + $0xc4] sm:$0xf] }
  0x51   :  { %571 = vmatpush.bf16.msrb.mxu3 %v1124_v7  ;;  %530 = vmatmul.bf16.vlgmr.msrb.gmra.mxu0 %v1634_v54  ;;  %v1341_v7 = vld [vmem:[#allocation7 + $0xc8] sm:$0xf0] }
  0x52   :  { %544 = vmatmul.bf16.vlgmr.msrb.gmra.mxu1 %v1636_v57  ;;  %872 = vmatpush.bf16.msra.mxu0 %v1300_v17 }
  0x53   :  { %558 = vmatmul.bf16.vlgmr.msrb.gmra.mxu2 %v1634_v54  ;;  %v1465_v54 = vld [vmem:[#allocation7 + $0xf4] sm:$0xf]  ;;  %886 = vmatpush.bf16.msra.mxu1 %v1364_v21 }
  0x54   :  { %572 = vmatmul.bf16.vlgmr.msrb.gmra.mxu3 %v1636_v57  ;;  %v1368_v57 = vor.u32 %v1465_v54, %v1365_v23  ;;  %900 = vmatpush.bf16.msra.mxu2 %v1304_v22  ;;  %v1441_v21 = vld [vmem:[#allocation7 + $0x34] sm:$0xf]  ;;  %v1269_v22 = vld [vmem:[#allocation7 + $0x38] sm:$0xf0] }
  0x56   :  { %914 = vmatpush.bf16.msra.mxu3 %v1368_v57  ;;  %873 = vmatpush.bf16.msra.mxu0 %v1292_v29  ;;  %v1336_v29 = vor.u32 %v1457_v26, %v1333_v27 }
  0x57   :  { %887 = vmatpush.bf16.msra.mxu1 %v1356_v33  ;;  %v1323_v33 = vld [vmem:[#allocation7 + $0xa0] sm:$0xf] }
  0x58   :  { %901 = vmatpush.bf16.msra.mxu2 %v1296_v34 }
  0x5a   :  { %915 = vmatpush.bf16.msra.mxu3 %v1360_v37  ;;  %874 = vmatpush.bf16.msra.mxu0 %v1284_v45  ;;  %v1455_v45 = vld [vmem:[#allocation7 + $0xa4] sm:$0xf] }
  0x5b   :  { %888 = vmatpush.bf16.msra.mxu1 %v1348_v49  ;;  %v1328_v49 = vor.u32 %v1455_v45, %v1325_v47 }
  0x5c   :  { %902 = vmatpush.bf16.msra.mxu2 %v1288_v50  ;;  %v1251_v50 = vld [vmem:[#allocation7 + $0x10] sm:$0xf] }
  0x5e   :  { %916 = vmatpush.bf16.msra.mxu3 %v1352_v53  ;;  %875 = vmatpush.bf16.msra.mxu0 %v1276_v63  ;;  %v1316_v63 = vor.u32 %v1454_v58, %v1315_v52 }
  0x5f   :  { %889 = vmatpush.bf16.msra.mxu1 %v1340_v4 }
  0x60   :  { %903 = vmatpush.bf16.msra.mxu2 %v1280_v5 }
  0xae   :  { %v475_v8 = vpop.f32.mrf.mxu0 }
  0xaf   :  { %v489_v9 = vpop.f32.mrf.mxu1 }
  0xb0   :  { %v490_v43 = vadd.f32 %v489_v9, %v475_v8  ;;  %v1344_v8 = vor.u32 %v1459_v6, %v1341_v7  ;;  %v1243_v6 = vld [vmem:[#allocation7] sm:$0xf]  ;;  %v1436_v7 = vld [vmem:[#allocation7 + $0x4] sm:$0xf0] }
  0xb2   :  { %917 = vmatpush.bf16.msra.mxu3 %v1344_v8  ;;  %v1307_v8 = vld [vmem:[#allocation7 + $0x80] sm:$0xf] }
  0xb6   :  { %v503_v10 = vpop.f32.mrf.mxu2  ;;  %v1646_v12 = vpop.f32.mrf.mxu0  ;;  %918 = vmatpush.bf16.msra.mxu3 %v1336_v29 }
  0xb7   :  { %v517_v11 = vpop.f32.mrf.mxu3  ;;  %v1648_v13 = vpop.f32.mrf.mxu1 }
  0xb8   :  { %v518_v44 = vadd.f32 %v517_v11, %v503_v10  ;;  %v492_v9 = vadd.f32 %v1648_v13, %v1646_v12  ;;  %v1267_v11 = vld [vmem:[#allocation7 + $0x30] sm:$0xf]  ;;  %v1332_v12 = vor.u32 %v1458_v20, %v1331_v15  ;;  %v1272_v13 = vor.u32 %v1441_v21, %v1269_v22 }
  0xb9   :  { %v1268_v19 = vor.u32 %v1442_v14, %v1267_v11  ;;  %v1435_v11 = vld [vmem:[#allocation7 + $0x4] sm:$0xf]  ;;  %v1245_v14 = vld [vmem:[#allocation7 + $0x8] sm:$0xf0] }
  0xba   :  { %v578_v61 = vpack.c.bf16 %v518_v44, %v490_v43  ;;  %890 = vmatpush.bf16.msra.mxu1 %v1332_v12  ;;  %904 = vmatpush.bf16.msra.mxu2 %v1272_v13 }
  0xbb   :  { %876 = vmatpush.bf16.msra.mxu0 %v1268_v19  ;;  %919 = vmatpush.bf16.msra.mxu3 %v1328_v49  ;;  %v1451_v19 = vld [vmem:[#allocation7 + $0x84] sm:$0xf] }
  0xbc   :  { %v580_v16 = vunpack.c.l.bf16 %v578_v61  ;;  %v581_v17 = vunpack.c.h.bf16 %v578_v61 }
  0xbe   :  { %v1650_v24 = vpop.f32.mrf.mxu2 }
  0xbf   :  { %v519_v28 = vpop.f32.mrf.mxu3 }
  0xc0   :  { %v520_v18 = vadd.f32 %v519_v28, %v1650_v24  ;;  %v1259_v28 = vld [vmem:[#allocation7 + $0x20] sm:$0xf] }
  0xc1   :  { %v1260_v37 = vor.u32 %v1440_v32, %v1259_v28 }
  0xc2   :  { %v579_v34 = vpack.c.bf16 %v520_v18, %v492_v9  ;;  %v1244_v9 = vor.u32 %v1436_v7, %v1243_v6  ;;  %v1248_v18 = vor.u32 %v1435_v11, %v1245_v14 }
  0xc3   :  { %877 = vmatpush.bf16.msra.mxu0 %v1260_v37 }
  0xc4   :  { %v582_v53 = vunpack.c.l.bf16 %v579_v34 }
  0xce   :  { %v531_v38 = vpop.f32.mrf.mxu0 }
  0xcf   :  { %v545_v39 = vpop.f32.mrf.mxu1 }
  0xd0   :  { %v546_v55 = vadd.f32 %v545_v39, %v531_v38  ;;  %v1456_v38 = vld [vmem:[#allocation7 + $0xa4] sm:$0xf0]  ;;  %v1439_v39 = vld [vmem:[#allocation7 + $0x24] sm:$0xf] }
  0xd1   :  { %v1324_v44 = vor.u32 %v1456_v38, %v1323_v33  ;;  %v1264_v46 = vor.u32 %v1439_v39, %v1261_v40 }
  0xd3   :  { %891 = vmatpush.bf16.msra.mxu1 %v1324_v44  ;;  %905 = vmatpush.bf16.msra.mxu2 %v1264_v46 }
  0xd6   :  { %v559_v56 = vpop.f32.mrf.mxu2  ;;  %v533_v57 = vpop.f32.mrf.mxu0 }
  0xd7   :  { %v573_v62 = vpop.f32.mrf.mxu3  ;;  %v547_v25 = vpop.f32.mrf.mxu1  ;;  %892 = vmatpush.bf16.msra.mxu1 %v1316_v63  ;;  %906 = vmatpush.bf16.msra.mxu2 %v1256_v0 }
  0xd8   :  { %v574_v3 = vadd.f32 %v573_v62, %v559_v56  ;;  %v548_v35 = vadd.f32 %v547_v25, %v533_v57  ;;  %v1252_v56 = vor.u32 %v1438_v51, %v1251_v50 }
  0xda   :  { %v584_v10 = vpack.c.bf16 %v574_v3, %v546_v55  ;;  %v583_v55 = vunpack.c.h.bf16 %v579_v34  ;;  %878 = vmatpush.bf16.msra.mxu0 %v1252_v56  ;;  %v1320_v3 = vor.u32 %v1453_v1, %v1317_v2 }
  0xdb   :  { %907 = vmatpush.bf16.msra.mxu2 %v1248_v18 }
  0xdc   :  { %v586_v54 = vunpack.c.l.bf16 %v584_v10  ;;  %v587_v23 = vunpack.c.h.bf16 %v584_v10  ;;  %v1452_v10 = vld [vmem:[#allocation7 + $0x84] sm:$0xf0]  ;;  %920 = vmatpush.bf16.msra.mxu3 %v1320_v3 }
  0xde   :  { %v1655_v30 = vmul.f32 %v586_v54, %v580_v16  ;;  %v1657_v31 = vmul.f32 %v587_v23, %v581_v17  ;;  %v561_v24 = vpop.f32.mrf.mxu2  ;;  %v1308_v17 = vor.u32 %v1452_v10, %v1307_v8  ;;  %879 = vmatpush.bf16.msra.mxu0 %v1244_v9  ;;  %v1309_v54 = vld [vmem:[#allocation7 + $0x88] sm:$0xf0] }
  0xdf   :  { %v575_v36 = vpop.f32.mrf.mxu3  ;;  %v1312_v57 = vor.u32 %v1451_v19, %v1309_v54 }
  0xe0   :  { %v1237_v41 = vmul.f32 -1.442695, %v1655_v30  ;;  %v1238_v42 = vmul.f32 -1.442695, %v1657_v31  ;;  %v576_v43 = vadd.f32 %v575_v36, %v561_v24  ;;  %893 = vmatpush.bf16.msra.mxu1 %v1308_v17 }
  0xe1   :  { %921 = vmatpush.bf16.msra.mxu3 %v1312_v57 }
  0xe2   :  { %1476 = vpow2.f32 %v1237_v41  ;;  %v585_v48 = vpack.c.bf16 %v576_v43, %v548_v35 }
  0xe3   :  { %1478 = vpow2.f32 %v1238_v42 }
  0xe4   :  { %v588_v61 = vunpack.c.l.bf16 %v585_v48  ;;  %v589_v62 = vunpack.c.h.bf16 %v585_v48 }
  0xe6   :  { %v1661_v4 = vmul.f32 %v588_v61, %v582_v53  ;;  %v1663_v5 = vmul.f32 %v589_v62, %v583_v55 }
  0xe8   :  { %v1477_v15 = vpop.eup %1476  ;;  %v1239_v16 = vmul.f32 -1.442695, %v1661_v4  ;;  %v1240_v22 = vmul.f32 -1.442695, %v1663_v5 }
  0xe9   :  { %v1479_v20 = vpop.eup %1478  ;;  %v606_v21 = vadd.f32 1.0, %v1477_v15 }
  0xea   :  { %v607_v23 = vadd.f32 1.0, %v1479_v20  ;;  %1480 = vpow2.f32 %v1239_v16 }
  0xeb   :  { %1482 = vrcp.f32 %v606_v21  ;;  %vm615_vm1 = vweird.f32 %v606_v21  ;;  %v619_v39 = vand.u32 2147483647, %v606_v21  ;;  %v621_v40 = vand.u32 2147483648, %v606_v21 }
  0xec   :  { %1484 = vrcp.f32 %v607_v23  ;;  %vm630_vm2 = vweird.f32 %v607_v23  ;;  %v634_v42 = vand.u32 2147483647, %v607_v23  ;;  %v636_v47 = vand.u32 2147483648, %v607_v23 }
  0xed   :  { %1486 = vpow2.f32 %v1240_v22  ;;  %vm620_vm6 = vcmp.eq.f32.partialorder %v619_v39, 8.507059e+37  ;;  %v622_v52 = vor.u32 1.1754944e-38, %v621_v40 }
  0xee   :  { %v637_v0 = vor.u32 1.1754944e-38, %v636_v47  ;;  %vm635_vm12 = vcmp.eq.f32.partialorder %v634_v42, 8.507059e+37 }
  0xf0   :  { %v1481_v25 = vpop.eup %1480 }
  0xf1   :  { %v1483_v12 = vpop.eup %1482  ;;  %v608_v13 = vadd.f32 1.0, %v1481_v25 }
  0xf2   :  { %v1485_v26 = vpop.eup %1484  ;;  %v611_v27 = vmul.f32 %v1483_v12, %v606_v21  ;;  %vm616_vm0 = vweird.f32 %v1483_v12 }
  0xf3   :  { %v1487_v29 = vpop.eup %1486  ;;  %v626_v24 = vmul.f32 %v1485_v26, %v607_v23  ;;  %1488 = vrcp.f32 %v608_v13  ;;  %v651_v44 = vand.u32 2147483648, %v608_v13  ;;  %vm1667_vm3 = vmor %vm615_vm1, %vm616_vm0  ;;  %vm631_vm4 = vweird.f32 %v1485_v26 }
  0xf4   :  { %v612_v28 = vsub.f32 1.0, %v611_v27  ;;  %v609_v32 = vadd.f32 1.0, %v1487_v29  ;;  %v649_v51 = vand.u32 2147483647, %v608_v13  ;;  %vm645_vm7 = vweird.f32 %v608_v13  ;;  %vm1674_vm8 = vmor %vm630_vm2, %vm631_vm4 }
  0xf5   :  { %v627_v33 = vsub.f32 1.0, %v626_v24  ;;  %v652_v58 = vor.u32 1.1754944e-38, %v651_v44 }
  0xf6   :  { %v613_v34 = vmul.f32 %v1483_v12, %v612_v28  ;;  %1490 = vrcp.f32 %v609_v32  ;;  %v664_v59 = vand.u32 2147483647, %v609_v32  ;;  %v666_v60 = vand.u32 2147483648, %v609_v32 }
  0xf7   :  { %v628_v36 = vmul.f32 %v1485_v26, %v627_v33  ;;  %vm650_vm11 = vcmp.eq.f32.partialorder %v649_v51, 8.507059e+37  ;;  %vm660_vm13 = vweird.f32 %v609_v32 }
  0xf8   :  { %v614_v37 = vadd.f32 %v1483_v12, %v613_v34  ;;  %v667_v8 = vor.u32 1.1754944e-38, %v666_v60  ;;  %vm665_vm15 = vcmp.eq.f32.partialorder %v664_v59, 8.507059e+37 }
  0xf9   :  { %v1489_v35 = vpop.eup %1488  ;;  %v629_v46 = vadd.f32 %v1485_v26, %v628_v36 }
  0xfa   :  { %v641_v38 = vmul.f32 %v1489_v35, %v608_v13  ;;  %v618_v49 = vsel %vm1667_vm3, %v1483_v12, %v614_v37  ;;  %vm646_vm5 = vweird.f32 %v1489_v35 }
  0xfb   :  { %v623_v61 = vsel %vm620_vm6, %v622_v52, %v618_v49  ;;  %v633_v62 = vsel %vm1674_vm8, %v1485_v26, %v629_v46  ;;  %vm647_vm9 = vmor %vm645_vm7, %vm646_vm5 }
  0xfc   :  { %v1491_v41 = vpop.eup %1490  ;;  %v642_v43 = vsub.f32 1.0, %v641_v38  ;;  %v638_v6 = vsel %vm635_vm12, %v637_v0, %v633_v62  ;;  %v670_v7 = vmul.f32 %v623_v61, %v1655_v30 }
  0xfd   :  { %v656_v48 = vmul.f32 %v1491_v41, %v609_v32  ;;  %vm661_vm10 = vweird.f32 %v1491_v41  ;;  %v671_v15 = vmul.f32 %v638_v6, %v1657_v31 }
  0xfe   :  { %v643_v50 = vmul.f32 %v1489_v35, %v642_v43  ;;  %vm662_vm14 = vmor %vm660_vm13, %vm661_vm10 }
  0xff   :  { %v657_v53 = vsub.f32 1.0, %v656_v48 }
 0x100   :  { %v644_v56 = vadd.f32 %v1489_v35, %v643_v50 }
 0x101   :  { %v658_v63 = vmul.f32 %v1491_v41, %v657_v53 }
 0x102   :  { %v648_v1 = vsel %vm647_vm9, %v1489_v35, %v644_v56 }
 0x103   :  { %v653_v2 = vsel %vm650_vm11, %v652_v58, %v648_v1  ;;  %v659_v3 = vadd.f32 %v1491_v41, %v658_v63 }
 0x104   :  { %v672_v9 = vmul.f32 %v653_v2, %v1661_v4 }
 0x105   :  { %v663_v10 = vsel %vm662_vm14, %v1491_v41, %v659_v3 }
 0x106   :  { %v668_v11 = vsel %vm665_vm15, %v667_v8, %v663_v10  ;;  %v678_v14 = vpack.c.bf16 %v672_v9, %v670_v7 }
 0x107   :  { %v673_v16 = vmul.f32 %v668_v11, %v1663_v5 }
 0x108   :  { %880 = vmatmul.bf16.vlgmr.msra.gmra.mxu0 %v678_v14  ;;  %908 = vmatmul.bf16.vlgmr.msra.gmra.mxu2 %v678_v14 }
 0x109   :  { %v679_v17 = vpack.c.bf16 %v673_v16, %v671_v15 }
 0x10b   :  { %894 = vmatmul.bf16.vlgmr.msra.gmra.mxu1 %v679_v17  ;;  %922 = vmatmul.bf16.vlgmr.msra.gmra.mxu3 %v679_v17 }
 0x185   :  { %v881_v18 = vpop.f32.mrf.mxu0 }
 0x188   :  { %v895_v19 = vpop.f32.mrf.mxu1 }
 0x189   :  { %v896_v22 = vadd.f32 %v895_v19, %v881_v18 }
 0x18b   :  { %v909_v30 = vpop.f32.mrf.mxu2 }
 0x18d   :  { %v883_v21 = vpop.f32.mrf.mxu0 }
 0x18e   :  { %v923_v20 = vpop.f32.mrf.mxu3 }
 0x18f   :  { %v924_v57 = vadd.f32 %v923_v20, %v909_v30 }
 0x190   :  { %v897_v4 = vpop.f32.mrf.mxu1 }
 0x191   :  { %v898_v54 = vadd.f32 %v897_v4, %v883_v21 }
 0x193   :  { %v911_v23 = vpop.f32.mrf.mxu2  ;;  %v943_v25 = vpack.c.bf16 %v898_v54, %v896_v22 }
 0x195   :  { %v945_v31 = vunpack.c.l.bf16 %v943_v25  ;;  %v947_v13 = vunpack.c.h.bf16 %v943_v25 }
 0x196   :  { %v925_v12 = vpop.f32.mrf.mxu3 }
 0x197   :  { %v926_v5 = vadd.f32 %v925_v12, %v911_v23  ;;  %951 = vst [vmem:[#allocation8 + $0x10] sm:$0xff] %v947_v13 }
 0x198   :  { %949 = vst [vmem:[#allocation8] sm:$0xff] %v945_v31 }
 0x199   :  { %v944_v26 = vpack.c.bf16 %v926_v5, %v924_v57 }
 0x19b   :  { %v946_v27 = vunpack.c.l.bf16 %v944_v26  ;;  %v948_v29 = vunpack.c.h.bf16 %v944_v26 }
 0x19d   :  { %952 = vst [vmem:[#allocation8 + $0x18] sm:$0xff] %v948_v29 }
 0x19e   :  { %950 = vst [vmem:[#allocation8 + $0x8] sm:$0xff] %v946_v27 }
 0x19f   :  { %965 = dma.vmem_to_hbm [thread:$0]  %s958_s29, 512, %s960_s5, [#allocation4], %s1595_s20, %s1595_s20, %s1596_s21  }
 0x1a0   :  { %1592 = dma.done.wait [#allocation4], 512  }
 0x1a1   :  { %1593 = vsyncadd [#allocation4], 4294966784 }
 0x1a2   :  { %970 = vsyncpa [#allocation3], 1 }
 0x1a3   :  { %971 = vsyncpa [#allocation6], 1 }
 0x1a4   :  { %972 = vsyncpa [#allocation4], 1 }

</bundles_post_ra>
